<compile_context>
chip_gen: v7x
topology: tpu7x:2x2x1
jax: 0.10.0
libtpu: 0.0.40
codegen_flags: <defaults>
</compile_context>

<pallas_src>
import functools
import math

import jax
import jax.numpy as jnp
from jax.experimental import pallas as pl
from jax.experimental.pallas import tpu as pltpu


# ---------------------------------------------------------------------------
# Kernel
# ---------------------------------------------------------------------------
def _pick_group(kernel_size: int) -> int:
    """Tap-grouping factor for the two-level window sum (G == K -> one level)."""
    if kernel_size < 8:
        return kernel_size
    return max(2, int(round(math.sqrt(kernel_size))))


def _mavg_kernel(x_ref, o_ref, *scratch, K, G, pad_l, pad_r, L, C):
    """Lane-dense stride-1 moving average on flattened (time*channel) lanes.

    x_ref : (bt, L*C)     unpadded input slab
    o_ref : (bt, Lout*C)  output block, Lout = L + pad_l + pad_r - K + 1
    scratch (in order):
      xp_ref (bt, Lp*C)            -- only if pad_l + pad_r > 0
      ps_ref (bt, (Lp-G+1)*C) f32  -- only if G < K (two-level partial sums)
    """
    idx = 0
    xp_ref = None
    ps_ref = None
    if pad_l + pad_r > 0:
        xp_ref = scratch[idx]
        idx += 1
    if G < K:
        ps_ref = scratch[idx]
        idx += 1

    lout_f = o_ref.shape[1]

    if xp_ref is not None:
        # Fused edge-replication padding in VMEM; one store per region.
        xp_ref[:, pl.ds(pad_l * C, L * C)] = x_ref[...]
        if pad_l > 0:
            first = x_ref[:, 0:C]
            xp_ref[:, pl.ds(0, pad_l * C)] = jnp.concatenate([first] * pad_l, axis=1)
        if pad_r > 0:
            last = x_ref[:, (L - 1) * C:L * C]
            xp_ref[:, pl.ds((pad_l + L) * C, pad_r * C)] = jnp.concatenate(
                [last] * pad_r, axis=1)
        src = xp_ref
    else:
        src = x_ref  # no replication needed: taps come straight from the input

    if ps_ref is not None:
        # Two-level factorization: partial sums of G consecutive taps, then
        # K//G strided reads of the partials (plus K%G leftover taps).
        nG, _ = K // G, K % G
        pf = ps_ref.shape[1]                       # (Lp - G + 1) * C
        pacc = src[:, pl.ds(0, pf)].astype(jnp.float32)
        for g in range(1, G):
            pacc = pacc + src[:, pl.ds(g * C, pf)].astype(jnp.float32)
        ps_ref[...] = pacc
        acc = ps_ref[:, pl.ds(0, lout_f)]
        for j in range(1, nG):
            acc = acc + ps_ref[:, pl.ds(j * G * C, lout_f)]
        for k in range(nG * G, K):                 # remainder taps (if K % G)
            acc = acc + src[:, pl.ds(k * C, lout_f)].astype(jnp.float32)
    else:
        acc = src[:, pl.ds(0, lout_f)].astype(jnp.float32)
        for k in range(1, K):
            acc = acc + src[:, pl.ds(k * C, lout_f)].astype(jnp.float32)

    o_ref[...] = (acc * (1.0 / K)).astype(o_ref.dtype)


# ---------------------------------------------------------------------------
# Planning helpers (generation-aware VMEM budgets, batch tiling)
# ---------------------------------------------------------------------------
def _vmem_budgets():
    """Return (vmem_limit_bytes, per-grid-step tile budget)."""
    cap = None
    try:
        cap = pltpu.get_tpu_info().vmem_capacity_bytes
    except Exception:
        cap = None
    if cap is not None and cap >= 100 * 1024 * 1024:
        # v5e / v6e: 128 MiB physical VMEM -> bigger blocks amortize per-step cost.
        return 64 * 1024 * 1024, 20 * 1024 * 1024
    # v7x (64 MiB physical VMEM) or unknown: stay conservative.
    return 32 * 1024 * 1024, 8 * 1024 * 1024


def _row_bytes(L, pad_l, pad_r, K, G, C, itemsize):
    """Per-batch-row live VMEM: double-buffered in/out blocks + kernel scratch."""
    Lp = L + pad_l + pad_r
    Lout = Lp - K + 1
    b = (2 * L + 2 * Lout) * C * itemsize
    if pad_l + pad_r > 0:
        b += Lp * C * itemsize
    if G < K:
        b += (Lp - G + 1) * C * 4
    return b


def _plan_batch(B, row_bytes, budget):
    """Pick (padded batch Bp, rows-per-step bt).

    bt must be a multiple of 8 (or equal to the full batch).  Prefer >=2 grid
    steps (v7x megacore) and >=4 steps when blocks stay >= 1 MiB (pipeline
    steady state); pad the batch to a multiple of 8 only when waste <= 25%.
    """
    def fits(bt):
        return bt * row_bytes <= budget

    Bp8 = -(-B // 8) * 8
    if Bp8 >= 16 and fits(8) and (Bp8 - B) * 4 <= B:
        cands = [bt for bt in range(8, Bp8 // 2 + 1, 8)
                 if Bp8 % bt == 0 and fits(bt)]
        if cands:
            deep = [bt for bt in cands
                    if Bp8 // bt >= 4 and bt * row_bytes >= (1 << 20)]
            return (Bp8, max(deep)) if deep else (Bp8, max(cands))
    if B % 8 == 0:
        cands = [bt for bt in range(8, B + 1, 8) if B % bt == 0 and fits(bt)]
        return (B, max(cands)) if cands else (B, 8)   # best effort
    return B, B   # full-extent single block (legal for any B)


# ---------------------------------------------------------------------------
# pallas_call wrappers
# ---------------------------------------------------------------------------
def _moving_avg_rows(x, K, pad_l, pad_r, budget, vmem_limit):
    """x: (B, L, C) -> (B, Lout, C), stride-1 windowed mean with replicate pads."""
    B, L, C = x.shape
    G = _pick_group(K)
    Lp = L + pad_l + pad_r
    Lout = Lp - K + 1
    itemsize = x.dtype.itemsize
    Bp, bt = _plan_batch(B, _row_bytes(L, pad_l, pad_r, K, G, C, itemsize), budget)

    Lf, Loutf = L * C, Lout * C
    xf = x.reshape(B, Lf)                  # contiguous collapse: free
    if Bp != B:
        xf = jnp.pad(xf, ((0, Bp - B), (0, 0)))

    scratch = []
    if pad_l + pad_r > 0:
        scratch.append(pltpu.VMEM((bt, Lp * C), x.dtype))
    if G < K:
        scratch.append(pltpu.VMEM((bt, (Lp - G + 1) * C), jnp.float32))

    kernel = functools.partial(_mavg_kernel, K=K, G=G,
                               pad_l=pad_l, pad_r=pad_r, L=L, C=C)
    yf = pl.pallas_call(
        kernel,
        out_shape=jax.ShapeDtypeStruct((Bp, Loutf), x.dtype),
        grid=(Bp // bt,),
        in_specs=[pl.BlockSpec((bt, Lf), lambda b: (b, 0))],
        out_specs=pl.BlockSpec((bt, Loutf), lambda b: (b, 0)),
        scratch_shapes=scratch,
        compiler_params=pltpu.CompilerParams(
            dimension_semantics=("parallel",),
            vmem_limit_bytes=vmem_limit,
        ),
        cost_estimate=pl.CostEstimate(
            flops=int(Bp) * int(Loutf) * (K + 1),
            transcendentals=0,
            bytes_accessed=int(Bp) * (int(Lf) + int(Loutf)) * itemsize,
        ),
    )(xf)
    if Bp != B:
        yf = yf[:B]
    return yf.reshape(B, Lout, C)


def _moving_avg_chunked(x, K, pad, budget, vmem_limit):
    """Exact time-chunked driver for rows too long to fit one VMEM block.

    Interior chunks need no replication (halo comes from the data slice);
    only the first/last chunk carry the replicate pads.
    """
    B, L, C = x.shape
    G = _pick_group(K)
    itemsize = x.dtype.itemsize
    Lout = L + 2 * pad - K + 1
    bt_min = B if B < 8 else 8

    Tt = Lout
    while Tt > 1 and bt_min * _row_bytes(min(Tt + K - 1, L), 0, 0,
                                         K, G, C, itemsize) > budget:
        Tt = max(1, Tt // 2)

    ys = []
    t0 = 0
    while t0 < Lout:
        t1 = min(t0 + Tt, Lout)
        lo = max(t0 - pad, 0)
        hi = min(t1 + K - 1 - pad, L)
        pad_l = lo - (t0 - pad)
        pad_r = (t1 + K - 1 - pad) - hi
        ys.append(_moving_avg_rows(x[:, lo:hi, :], K, pad_l, pad_r,
                                   budget, vmem_limit))
        t0 = t1
    return jnp.concatenate(ys, axis=1)


def moving_avg(x: jax.Array, kernel_size: int, stride: int = 1,
               *, _budget_bytes: int | None = None) -> jax.Array:
    """Pallas equivalent of moving_avg.forward. x: (B, L, C)."""
    B, L, C = x.shape
    K = int(kernel_size)
    pad = (K - 1) // 2
    vmem_limit, budget = _vmem_budgets()
    if _budget_bytes is not None:          # test hook to force time chunking
        budget = _budget_bytes

    G = _pick_group(K)
    bt_min = B if B < 8 else 8
    row = _row_bytes(L, pad, pad, K, G, C, x.dtype.itemsize)
    if bt_min * row > budget and L >= 2 * K:
        y1 = _moving_avg_chunked(x, K, pad, budget, vmem_limit)
    else:
        y1 = _moving_avg_rows(x, K, pad, pad, budget, vmem_limit)

    if stride == 1:
        return y1
    # AvgPool1d(stride=s) keeps every s-th stride-1 window; stride>1 is unused
    # by LinearTS, so the wrapper downsample is acceptable here.
    return y1[:, ::stride, :]


# ---------------------------------------------------------------------------
# Pure-JAX reference mirroring the PyTorch module
# ---------------------------------------------------------------------------
def _reference(x, kernel_size, stride):
    pad = (kernel_size - 1) // 2
    front = jnp.repeat(x[:, 0:1, :], pad, axis=1)
    end = jnp.repeat(x[:, -1:, :], pad, axis=1)
    xp = jnp.concatenate([front, x, end], axis=1)
    Lp = xp.shape[1]
    Lout = (Lp - kernel_size) // stride + 1
    windows = jnp.stack(
        [xp[:, t * stride:t * stride + kernel_size, :] for t in range(Lout)],
        axis=1,
    )  # (B, Lout, K, C)
    return windows.mean(axis=2)


if __name__ == "__main__":
    key = jax.random.PRNGKey(0)
    k1, k2, k3 = jax.random.split(key, 3)

    # 1) LinearTS-style small kernel, stride 1.
    x1 = jax.random.normal(k1, (2, 16, 8), dtype=jnp.float32)
    y1 = jax.block_until_ready(moving_avg(x1, 5, 1))
    assert jnp.allclose(y1, _reference(x1, 5, 1), atol=1e-5, rtol=1e-5), "K=5"

    # 2) DLinear's common K=25 -> two-level partial-sum path.
    x2 = jax.random.normal(k2, (2, 32, 7), dtype=jnp.float32)
    y2 = jax.block_until_ready(moving_avg(x2, 25, 1))
    assert jnp.allclose(y2, _reference(x2, 25, 1), atol=1e-5, rtol=1e-5), "K=25"

    # 3) Even kernel size (asymmetric effective padding).
    y3 = jax.block_until_ready(moving_avg(x1, 4, 1))
    assert jnp.allclose(y3, _reference(x1, 4, 1), atol=1e-5, rtol=1e-5), "even K"

    # 4) stride > 1 (stride-1 kernel + wrapper downsample).
    y4 = jax.block_until_ready(moving_avg(x1, 5, 2))
    assert jnp.allclose(y4, _reference(x1, 5, 2), atol=1e-5, rtol=1e-5), "stride"

    # 5) Batch not a multiple of 8 -> padded batch, 2 grid steps.
    x5 = jax.random.normal(k3, (14, 16, 4), dtype=jnp.float32)
    y5 = jax.block_until_ready(moving_avg(x5, 7, 1))
    assert jnp.allclose(y5, _reference(x5, 7, 1), atol=1e-5, rtol=1e-5), "pad B"

    # 6) Forced tiny VMEM budget -> wrapper time-chunking path
    #    (exercises interior / left-pad / right-pad chunk variants).
    y6 = jax.block_until_ready(moving_avg(x1, 5, 1, _budget_bytes=2048))
    assert jnp.allclose(y6, _reference(x1, 5, 1), atol=1e-5, rtol=1e-5), "chunked"

    print("KERNEL_OK")
</pallas_src>

<mosaic_0001>
module attributes {stable_mosaic.version = 11 : i64} {
  func.func @_mavg_kernel(%arg0: i32, %arg1: memref<2x128xf32, #tpu.memory_space<vmem>>, %arg2: memref<2x128xf32, #tpu.memory_space<vmem>>, %arg3: memref<2x160xf32, #tpu.memory_space<vmem>>) attributes {dimension_semantics = [#tpu.dimension_semantics<parallel>], iteration_bounds = array<i64: 1>, scalar_prefetch = 0 : i64, scratch_operands = 1 : i64, tpu.core_type = #tpu.core_type<tc>, window_params = [{transform_indices = @transform_0, window_bounds = array<i64: 2, 128>}, {transform_indices = @transform_1, window_bounds = array<i64: 2, 128>}]} {
    %c0 = arith.constant 0 : index
    %c0_0 = arith.constant 0 : index
    %0 = vector.load %arg1[%c0, %c0_0] : memref<2x128xf32, #tpu.memory_space<vmem>>, vector<2x128xf32>
    %c0_1 = arith.constant 0 : index
    %c16 = arith.constant 16 : index
    %1 = vector.load %arg3[%c0_1, %c16] : memref<2x160xf32, #tpu.memory_space<vmem>>, vector<2x128xf32>
    tpu.vector_store %arg3[%c0_1, %c16], %0 {strides = array<i32>} : memref<2x160xf32, #tpu.memory_space<vmem>>, vector<2x128xf32>,
    %c0_2 = arith.constant 0 : index
    %c0_3 = arith.constant 0 : index
    %2 = vector.load %arg1[%c0_2, %c0_3] : memref<2x128xf32, #tpu.memory_space<vmem>>, vector<2x8xf32>
    %3 = tpu.concatenate %2, %2 in 1 : vector<2x8xf32>, vector<2x8xf32> -> vector<2x16xf32>
    %c0_4 = arith.constant 0 : index
    %c0_5 = arith.constant 0 : index
    %4 = vector.load %arg3[%c0_4, %c0_5] : memref<2x160xf32, #tpu.memory_space<vmem>>, vector<2x16xf32>
    tpu.vector_store %arg3[%c0_4, %c0_5], %3 {strides = array<i32>} : memref<2x160xf32, #tpu.memory_space<vmem>>, vector<2x16xf32>,
    %c0_6 = arith.constant 0 : index
    %c120 = arith.constant 120 : index
    %5 = vector.load %arg1[%c0_6, %c120] : memref<2x128xf32, #tpu.memory_space<vmem>>, vector<2x8xf32>
    %6 = tpu.concatenate %5, %5 in 1 : vector<2x8xf32>, vector<2x8xf32> -> vector<2x16xf32>
    %c0_7 = arith.constant 0 : index
    %c144 = arith.constant 144 : index
    %7 = vector.load %arg3[%c0_7, %c144] : memref<2x160xf32, #tpu.memory_space<vmem>>, vector<2x16xf32>
    tpu.vector_store %arg3[%c0_7, %c144], %6 {strides = array<i32>} : memref<2x160xf32, #tpu.memory_space<vmem>>, vector<2x16xf32>,
    %c0_8 = arith.constant 0 : index
    %c0_9 = arith.constant 0 : index
    %8 = vector.load %arg3[%c0_8, %c0_9] : memref<2x160xf32, #tpu.memory_space<vmem>>, vector<2x128xf32>
    %c0_10 = arith.constant 0 : index
    %c8 = arith.constant 8 : index
    %9 = vector.load %arg3[%c0_10, %c8] : memref<2x160xf32, #tpu.memory_space<vmem>>, vector<2x128xf32>
    %10 = arith.addf %8, %9 : vector<2x128xf32>
    %c0_11 = arith.constant 0 : index
    %c16_12 = arith.constant 16 : index
    %11 = vector.load %arg3[%c0_11, %c16_12] : memref<2x160xf32, #tpu.memory_space<vmem>>, vector<2x128xf32>
    %12 = arith.addf %10, %11 : vector<2x128xf32>
    %c0_13 = arith.constant 0 : index
    %c24 = arith.constant 24 : index
    %13 = vector.load %arg3[%c0_13, %c24] : memref<2x160xf32, #tpu.memory_space<vmem>>, vector<2x128xf32>
    %14 = arith.addf %12, %13 : vector<2x128xf32>
    %c0_14 = arith.constant 0 : index
    %c32 = arith.constant 32 : index
    %15 = vector.load %arg3[%c0_14, %c32] : memref<2x160xf32, #tpu.memory_space<vmem>>, vector<2x128xf32>
    %16 = arith.addf %14, %15 : vector<2x128xf32>
    %cst = arith.constant 2.000000e-01 : f32
    %17 = vector.broadcast %cst : f32 to vector<2x128xf32>
    %18 = arith.mulf %16, %17 : vector<2x128xf32>
    %c0_15 = arith.constant 0 : index
    %c0_16 = arith.constant 0 : index
    %19 = vector.load %arg2[%c0_15, %c0_16] : memref<2x128xf32, #tpu.memory_space<vmem>>, vector<2x128xf32>
    tpu.vector_store %arg2[%c0_15, %c0_16], %18 {strides = array<i32>} : memref<2x128xf32, #tpu.memory_space<vmem>>, vector<2x128xf32>,
    return
  }
  func.func @transform_0(%arg0: i32) -> (i32, i32) {
    %c0_i32 = arith.constant 0 : i32
    %c0_i32_0 = arith.constant 0 : i32
    return %arg0, %c0_i32 : i32, i32
  }
  func.func @transform_1(%arg0: i32) -> (i32, i32) {
    %c0_i32 = arith.constant 0 : i32
    %c0_i32_0 = arith.constant 0 : i32
    return %arg0, %c0_i32 : i32, i32
  }
}

</mosaic_0001>

<bundles_post_ra>
// kernel: tpu_custom_call.1
= control target key start
LH: loop header
LB: loop body
LE: loop exit
PB: predicated region body
PF: predicated region fallthrough
CT: control target
= control target key end

     0   :  { %6 = vsyncpa [#allocation4], 0  ;;  %s220_s0 = inlined_call_operand.hbm [shape: f32[2,128], index: 0, kind: input, shape index: {}]   ;;  %s221_s1 = inlined_call_operand.hbm [shape: f32[2,128], index: 1, kind: output, shape index: {}]  }
   0x1   :  { %7 = vsyncpa [#allocation5], 0  ;;  %s177_s6 = smov [#allocation3]   ;;  %s129_s10 = scalar_lea.hbm %s220_s0, 32 }
   0x2   :  { %s14_s7 = sshll.u32 %s177_s6, 4  ;;  %p130_p0 = scmp.ne.s32.totalorder %s220_s0, %s129_s10  ;;  %s15_s7 = int_to_ptr.vmem [resolvable:$true] %s14_s7 }
   0x3   :  { %p133_p1 = scmp.lt.u32.totalorder %s129_s10, %s220_s0 }
   0x5   :  { %p135_p2 = pnand %p133_p1, %p130_p0 }
   0x7   :  { %138 = shalt.err (!%p135_p2)
}
   0x8   :  { %s139_s15 = scalar_lea.vmem %s15_s7, 32  ;;  %p144_p4 = scmp.lt.s32.totalorder %s15_s7, %s15_s7 }
   0x9   :  { %p140_p3 = scmp.ne.s32.totalorder %s15_s7, %s139_s15  ;;  %p145_p5 = scmp.lt.s32.totalorder %s139_s15, %s139_s15 }
   0xb   :  { %p146_p6 = por %p145_p5, %p144_p4 }
   0xd   :  { %p147_p7 = pnand %p146_p6, %p140_p3 }
   0xf   :  { %150 = shalt.err (!%p147_p7)
}
  0x10   :  { %17 = dma.hbm_to_vmem [thread:$0]  %s220_s0, 32, %s15_s7, [#allocation4]  }
  0x11   :  { %173 = dma.done.wait [#allocation4], 32  }
  0x12   :  { %174 = vsyncadd [#allocation4], 4294967264  ;;  %v49_v0 = vld [vmem:[#allocation3] sm:$0x3]  ;;  %s178_s18 = smov 8   ;;  %s179_s19 = smov 16   ;;  %v62_v5 = vlaneseq }
  0x13   :  { %v119_v1 = vld.sshfl [vmem:[#allocation3] sm:$0x3 pattern:$0x76325410]  ;;  %51 = vrot.lane.b32.xlu0 %v49_v0, %s178_s18  ;;  %v180_v3 = vmov 1983009808  }
  0x14   :  { %30 = vrot.lane.b32.xlu1 %v119_v1, %s179_s19  ;;  %v40_v2 = vld [vmem:[#allocation3] sm:$0x3]  ;;  %v60_v4 = vunpack.c.l.s4 %v180_v3  ;;  %v63_v7 = vshrl.u32 %v62_v5, 7  ;;  %vm36_vm0 = vcmask 1041536   ;;  %vm37_vm1 = vcmask 125954   ;;  %s181_s0 = smov 112  }
  0x15   :  { %vm33_vm2 = vcmask 130048   ;;  %vm38_vm3 = vmor %vm37_vm1, %vm36_vm0  ;;  %vm45_vm4 = vcmask 64512   ;;  %vm47_vm5 = vcmask 123904   ;;  %vm69_vm6 = vcmask 255104   ;;  %s182_s20 = smov 120   ;;  %s183_s21 = smov 96  }
  0x16   :  { %v61_v6 = vunpack.c.0.s8 %v60_v4  ;;  %s184_s22 = smov 104   ;;  %vm77_vm7 = vcmask 982016   ;;  %vm84_vm8 = vcmask 916480   ;;  %vm91_vm9 = vcmask 850944   ;;  %s185_s23 = smov [#allocation6]  }
  0x17   :  { %54 = vrot.lane.b32.xlu0 %v49_v0, %s179_s19  ;;  %vm98_vm10 = vcmask 785408   ;;  %s110_s24 = sshll.u32 %s185_s23, 4  ;;  %s111_s24 = int_to_ptr.vmem [resolvable:$true] %s110_s24 }
  0x18   :  { %42 = vrot.lane.b32.xlu1 %v40_v2, %s178_s18  ;;  %v64_v11 = vsub.s32 %v61_v6, %v63_v7  ;;  %s151_s25 = scalar_lea.vmem %s111_s24, 32  ;;  %p156_p9 = scmp.lt.s32.totalorder %s111_s24, %s111_s24 }
  0x19   :  { %p152_p8 = scmp.ne.s32.totalorder %s111_s24, %s151_s25  ;;  %p157_p10 = scmp.lt.s32.totalorder %s151_s25, %s151_s25 }
  0x1b   :  { %p158_p11 = por %p157_p10, %p156_p9 }
  0x1d   :  { %p159_p12 = pnand %p158_p11, %p152_p8 }
  0x85   :  { %v52_v8 = vpop.permute.xlu0 %51 }
  0x86   :  { %v31_v9 = vpop.permute.xlu1 %30 }
  0x87   :  { %v32_v10 = vrot.slane %v31_v9, 6 }
  0x89   :  { %v34_v12 = vsel %vm33_vm2, %v32_v10, %v31_v9  ;;  %v55_v13 = vpop.permute.xlu0 %54 }
  0x8a   :  { %39 = vst.msk [vmem:[#allocation2] sm:$0xf] %vm38_vm3, %v34_v12  ;;  %v43_v14 = vpop.permute.xlu1 %42  ;;  %v57_v15 = vsel %vm45_vm4, %v52_v8, %v55_v13 }
  0x8b   :  { %v46_v16 = vsel %vm45_vm4, %v40_v2, %v43_v14  ;;  %v65_v17 = vrot.slane %v57_v15, %v64_v11 }
  0x8c   :  { %48 = vst.msk [vmem:[#allocation2] sm:$0x3] %vm47_vm5, %v46_v16 }
  0x8d   :  { %66 = vrot.lane.b32.xlu0 %v65_v17, %s179_s19 }
  0x93   :  { %v71_v24 = vld [vmem:[#allocation2] sm:$0x3] }
  0xff   :  { %v67_v18 = vpop.permute.xlu0 %66 }
 0x100   :  { %70 = vst.msk [vmem:[#allocation2 + $0x2] sm:$0x3] %vm69_vm6, %v67_v18 }
 0x107   :  { %v72_v19 = vld [vmem:[#allocation2] sm:$0xf] }
 0x108   :  { %81 = vrot.lane.b32.xlu0 %v72_v19, %s181_s0  ;;  %74 = vrot.lane.b32.xlu1 %v72_v19, %s182_s20 }
 0x10c   :  { %95 = vrot.lane.b32.xlu0 %v72_v19, %s183_s21  ;;  %88 = vrot.lane.b32.xlu1 %v72_v19, %s184_s22 }
 0x17a   :  { %v82_v20 = vpop.permute.xlu0 %81  ;;  %v75_v21 = vpop.permute.xlu1 %74 }
 0x17b   :  { %v83_v22 = vrot.slane %v82_v20, 2  ;;  %v76_v23 = vrot.slane %v75_v21, 2 }
 0x17d   :  { %v78_v25 = vsel %vm77_vm7, %v75_v21, %v76_v23  ;;  %v85_v29 = vsel %vm84_vm8, %v82_v20, %v83_v22 }
 0x17e   :  { %v80_v26 = vadd.f32 %v78_v25, %v71_v24  ;;  %v96_v27 = vpop.permute.xlu0 %95  ;;  %v89_v28 = vpop.permute.xlu1 %88 }
 0x17f   :  { %v97_v30 = vrot.slane %v96_v27, 2  ;;  %v90_v31 = vrot.slane %v89_v28, 2 }
 0x180   :  { %v87_v32 = vadd.f32 %v85_v29, %v80_v26 }
 0x181   :  { %v92_v33 = vsel %vm91_vm9, %v89_v28, %v90_v31  ;;  %v99_v35 = vsel %vm98_vm10, %v96_v27, %v97_v30 }
 0x182   :  { %v94_v34 = vadd.f32 %v92_v33, %v87_v32 }
 0x184   :  { %v101_v36 = vadd.f32 %v99_v35, %v94_v34 }
 0x186   :  { %v102_v37 = vmul.f32 0.2, %v101_v36 }
 0x188   :  { %103 = vst [vmem:[#allocation6] sm:$0x3] %v102_v37 }
 0x189   :  { %162 = shalt.err (!%p159_p12)
}
 0x18a   :  { %s163_s28 = scalar_lea.hbm %s221_s1, 32 }
 0x18b   :  { %p164_p13 = scmp.ne.s32.totalorder %s221_s1, %s163_s28  ;;  %p167_p0 = scmp.lt.u32.totalorder %s163_s28, %s221_s1 }
 0x18d   :  { %p169_p1 = pnand %p167_p0, %p164_p13 }
 0x18f   :  { %172 = shalt.err (!%p169_p1)
}
 0x190   :  { %113 = dma.vmem_to_hbm [thread:$0]  %s111_s24, 32, %s221_s1, [#allocation5]  }
 0x191   :  { %175 = dma.done.wait [#allocation5], 32  }
 0x192   :  { %176 = vsyncadd [#allocation5], 4294967264 }
 0x193   :  { %117 = vsyncpa [#allocation4], 1 }
 0x194   :  { %118 = vsyncpa [#allocation5], 1 }

</bundles_post_ra>
